<compile_context>
chip_gen: v6e
topology: v6e:2x2x1
jax: 0.10.0
libtpu: 0.0.40
codegen_flags: <defaults>
</compile_context>

<pallas_src>
import math

import jax
import jax.numpy as jnp
from jax.experimental import pallas as pl
from jax.experimental.pallas import tpu as pltpu


# --------------------------------------------------------------------------------------
# Kernels
# --------------------------------------------------------------------------------------
def _linear_kernel(x_ref, w_ref, b_ref, o_ref):
    # x: (M, Din) bf16, w: (Din, Dout) bf16, b: (1, Dout) f32 -> o: (M, Dout) f32
    o_ref[...] = (jnp.dot(x_ref[...], w_ref[...], preferred_element_type=jnp.float32)
                  + b_ref[...])


def _qproj_kernel(q_ref, wq_ref, bq_ref, selbk_ref, u_ref, beff_ref):
    # q: (B, D) bf16, wq: (D, AD) bf16 (pre-scaled by 1/sqrt(D)), bq: (1, AD) f32 (pre-scaled)
    # selbk: (AD, A) f32 with selbk[j, a] = bk[j] * [j // D == a]
    # u: (B, AD) f32, beff: (B, A) f32
    u = jnp.dot(q_ref[...], wq_ref[...], preferred_element_type=jnp.float32) + bq_ref[...]
    u_ref[...] = u
    beff_ref[...] = jnp.dot(u, selbk_ref[...], preferred_element_type=jnp.float32)


def _fold_score_kernel(u_ref, beff_ref, k_ref, wk_ref, sel_ref, o_ref):
    # u: (1, AD) f32, beff: (1, A) f32, k: (1, L, D) bf16, wk: (D, AD) bf16,
    # sel: (AD, A) f32 with sel[j, a] = [j // D == a]   ->   o: (L, A) f32
    u = u_ref[...]                                                     # (1, AD) f32 (scaled)
    # Per-batch fold: W_eff[d, a] = sum_{d'} Wk[d, a*D+d'] * u[a*D+d']  (tiny f32 matmul)
    w_eff = jnp.dot(wk_ref[...] * u, sel_ref[...],
                    preferred_element_type=jnp.float32)                # (D, A) f32
    # Score all L keys with one (L, D) @ (D, A) bf16 MXU matmul (f32 accumulation).
    scores = jnp.dot(k_ref[0], w_eff.astype(jnp.bfloat16),
                     preferred_element_type=jnp.float32)               # (L, A) f32
    o_ref[...] = scores + beff_ref[...]


# --------------------------------------------------------------------------------------
# Pallas wrappers
# --------------------------------------------------------------------------------------
def pallas_linear(x, w, b):
    """x: (M, Din), w: (Din, Dout), b: (Dout,) -> (M, Dout) f32."""
    M, Din = x.shape
    Dout = w.shape[1]
    return pl.pallas_call(
        _linear_kernel,
        out_shape=jax.ShapeDtypeStruct((M, Dout), jnp.float32),
        grid_spec=pltpu.PrefetchScalarGridSpec(
            num_scalar_prefetch=0,
            grid=(1,),
            in_specs=[
                pl.BlockSpec((M, Din), lambda i: (0, 0)),
                pl.BlockSpec((Din, Dout), lambda i: (0, 0)),
                pl.BlockSpec((1, Dout), lambda i: (0, 0)),
            ],
            out_specs=pl.BlockSpec((M, Dout), lambda i: (0, 0)),
        ),
        compiler_params=pltpu.CompilerParams(dimension_semantics=("arbitrary",)),
    )(x.astype(jnp.bfloat16), w.astype(jnp.bfloat16),
      b.reshape(1, Dout).astype(jnp.float32))


def pallas_action_attention(queries, keys, wq, bq, wk, bk, model_dim, n_actions):
    """queries: (B, D), keys: (B, L, D), wq/wk: (D, A*D), bq/bk: (A*D,). Returns (B, L, A) f32."""
    B, D = queries.shape
    _, L, _ = keys.shape
    A = n_actions
    AD = A * D
    assert D == model_dim and wq.shape == (D, AD) and wk.shape == (D, AD)

    scale = 1.0 / math.sqrt(D)

    # Host-side constants: selector (sums each action's D-slice) and bias-folded selector.
    rows = jnp.arange(AD) // D
    sel = (rows[:, None] == jnp.arange(A)[None, :]).astype(jnp.float32)   # (AD, A)
    sel_bk = sel * bk.astype(jnp.float32)[:, None]                        # (AD, A)

    # bf16 on the MXU paths; 1/sqrt(D) folded into the query-side parameters.
    q_bf = queries.astype(jnp.bfloat16)
    k_bf = keys.astype(jnp.bfloat16)
    wq_s = (wq * scale).astype(jnp.bfloat16)
    wk_bf = wk.astype(jnp.bfloat16)
    bq_s = (bq * scale).reshape(1, AD).astype(jnp.float32)

    # ---- Kernel 1: batched query projection (all B rows in one matmul) ----
    u, beff = pl.pallas_call(
        _qproj_kernel,
        out_shape=(jax.ShapeDtypeStruct((B, AD), jnp.float32),
                   jax.ShapeDtypeStruct((B, A), jnp.float32)),
        grid_spec=pltpu.PrefetchScalarGridSpec(
            num_scalar_prefetch=0,
            grid=(1,),
            in_specs=[
                pl.BlockSpec((B, D), lambda i: (0, 0)),      # queries
                pl.BlockSpec((D, AD), lambda i: (0, 0)),     # Wq (pre-scaled)
                pl.BlockSpec((1, AD), lambda i: (0, 0)),     # bq (pre-scaled)
                pl.BlockSpec((AD, A), lambda i: (0, 0)),     # bk-folded selector
            ],
            out_specs=(pl.BlockSpec((B, AD), lambda i: (0, 0)),
                       pl.BlockSpec((B, A), lambda i: (0, 0))),
        ),
        compiler_params=pltpu.CompilerParams(dimension_semantics=("arbitrary",)),
    )(q_bf, wq_s, bq_s, sel_bk)

    # ---- Kernel 2: per-batch weight fold + key scoring (parallel over B) ----
    out2d = pl.pallas_call(
        _fold_score_kernel,
        out_shape=jax.ShapeDtypeStruct((B * L, A), jnp.float32),
        grid_spec=pltpu.PrefetchScalarGridSpec(
            num_scalar_prefetch=0,
            grid=(B,),
            in_specs=[
                pl.BlockSpec((1, AD), lambda b: (b, 0)),       # u (scaled query projection)
                pl.BlockSpec((1, A), lambda b: (b, 0)),        # beff
                pl.BlockSpec((1, L, D), lambda b: (b, 0, 0)),  # keys
                pl.BlockSpec((D, AD), lambda b: (0, 0)),       # Wk (grid-invariant)
                pl.BlockSpec((AD, A), lambda b: (0, 0)),       # selector (grid-invariant)
            ],
            out_specs=pl.BlockSpec((L, A), lambda b: (b, 0)),
        ),
        compiler_params=pltpu.CompilerParams(dimension_semantics=("parallel",)),
    )(u, beff, k_bf, wk_bf, sel)

    return out2d.reshape(B, L, A)


# --------------------------------------------------------------------------------------
# ActionBuilder forward (host-side split / reshape / concat, kernels for all compute)
# --------------------------------------------------------------------------------------
def parse_action_scheme(action_pattern):
    actions = {}
    idx = 0
    for part in action_pattern:
        if isinstance(part, int):
            key, l = None, part
        else:
            l, key = part
        if key not in actions:
            actions[key] = {'len': 0, 'split': [], 'idx': []}
        actions[key]['len'] += l
        actions[key]['split'].append(l)
        actions[key]['idx'].append(idx)
        idx += 1
    return actions, idx


def action_builder_forward(h, var_states, params, actions, n_parts, model_dim):
    B = h.shape[0]
    digits_parts = [None] * n_parts

    def assign(digits, info):
        off = 0
        for i, idx in enumerate(info['idx']):
            w = info['split'][i]
            digits_parts[idx] = digits[..., off:off + w].reshape(B, -1)
            off += w

    if None in actions:
        fp = params['fixed']
        fixed_digits = pallas_linear(h, fp['w'], fp['b'])
        assign(fixed_digits, actions[None])

    for key, p in params['var'].items():
        var_digits = pallas_action_attention(
            h, var_states[key], p['wq'], p['bq'], p['wk'], p['bk'],
            model_dim, actions[key]['len'])
        assign(var_digits, actions[key])

    return jnp.concatenate(digits_parts, axis=-1)


# --------------------------------------------------------------------------------------
# Pure-JAX f32 reference (mirrors the PyTorch module exactly)
# --------------------------------------------------------------------------------------
def _ref_action_attention(queries, keys, wq, bq, wk, bk, n_actions):
    B, D = queries.shape
    L = keys.shape[1]
    A = n_actions
    q = (queries @ wq + bq).reshape(B, A, D)
    k = (keys @ wk + bk).reshape(B, L, A, D)
    return jnp.einsum("bad,blad->bla", q, k) / math.sqrt(D)


def _ref_action_builder(h, var_states, params, actions, n_parts):
    B = h.shape[0]
    parts = [None] * n_parts

    def assign(digits, info):
        off = 0
        for i, idx in enumerate(info['idx']):
            w = info['split'][i]
            parts[idx] = digits[..., off:off + w].reshape(B, -1)
            off += w

    if None in actions:
        fp = params['fixed']
        assign(h @ fp['w'] + fp['b'], actions[None])
    for key, p in params['var'].items():
        v = _ref_action_attention(h, var_states[key], p['wq'], p['bq'], p['wk'], p['bk'],
                                  actions[key]['len'])
        assign(v, actions[key])
    return jnp.concatenate(parts, axis=-1)


# --------------------------------------------------------------------------------------
if __name__ == "__main__":
    model_dim = 32
    B, L = 2, 8
    scheme = {'action_pattern': [3, (4, 'enemy'), 2, (4, 'enemy')]}
    actions, n_parts = parse_action_scheme(scheme['action_pattern'])

    root = jax.random.PRNGKey(0)
    ks = jax.random.split(root, 10)
    h = jax.random.normal(ks[0], (B, model_dim), dtype=jnp.float32)
    var_states = {'enemy': jax.random.normal(ks[1], (B, L, model_dim), dtype=jnp.float32)}

    lim = 1.0 / math.sqrt(model_dim)

    def uinit(k, shape):
        return jax.random.uniform(k, shape, minval=-lim, maxval=lim, dtype=jnp.float32)

    n_fixed = actions[None]['len']
    A_enemy = actions['enemy']['len']
    AD = model_dim * A_enemy
    params = {
        'fixed': {'w': uinit(ks[2], (model_dim, n_fixed)),
                  'b': uinit(ks[3], (n_fixed,))},
        'var': {
            'enemy': {'wq': uinit(ks[4], (model_dim, AD)),
                      'bq': uinit(ks[5], (AD,)),
                      'wk': uinit(ks[6], (model_dim, AD)),
                      'bk': uinit(ks[7], (AD,))},
        },
    }

    out = action_builder_forward(h, var_states, params, actions, n_parts, model_dim)
    out = jax.block_until_ready(out)

    ref = _ref_action_builder(h, var_states, params, actions, n_parts)
    expected_width = 3 + L * 4 + 2 + L * 4   # fixed(3) + enemy(4·L) + fixed(2) + enemy(4·L)
    assert out.shape == (B, expected_width), out.shape
    # bf16 inputs / MXU path with f32 accumulation -> loosened tolerance vs the f32 reference.
    max_err = float(jnp.max(jnp.abs(out - ref)))
    assert jnp.allclose(out, ref, atol=2e-2, rtol=2e-2), f"mismatch vs reference, max_err={max_err}"

    print("KERNEL_OK")
</pallas_src>

<mosaic_0001>
module attributes {stable_mosaic.version = 11 : i64} {
  func.func @_linear_kernel(%arg0: i32, %arg1: memref<2x32xbf16, #tpu.memory_space<vmem>>, %arg2: memref<32x5xbf16, #tpu.memory_space<vmem>>, %arg3: memref<1x5xf32, #tpu.memory_space<vmem>>, %arg4: memref<2x5xf32, #tpu.memory_space<vmem>>) attributes {dimension_semantics = [#tpu.dimension_semantics<arbitrary>], iteration_bounds = array<i64: 1>, scalar_prefetch = 0 : i64, scratch_operands = 0 : i64, tpu.core_type = #tpu.core_type<tc>, window_params = [{pipeline_mode = #tpu.pipeline_mode<synchronous>, transform_indices = @transform_0, window_bounds = array<i64: 2, 32>}, {pipeline_mode = #tpu.pipeline_mode<synchronous>, transform_indices = @transform_1, window_bounds = array<i64: 32, 5>}, {pipeline_mode = #tpu.pipeline_mode<synchronous>, transform_indices = @transform_2, window_bounds = array<i64: 1, 5>}, {pipeline_mode = #tpu.pipeline_mode<synchronous>, transform_indices = @transform_3, window_bounds = array<i64: 2, 5>}]} {
    %c0 = arith.constant 0 : index
    %c0_0 = arith.constant 0 : index
    %0 = vector.load %arg1[%c0, %c0_0] : memref<2x32xbf16, #tpu.memory_space<vmem>>, vector<2x32xbf16>
    %c0_1 = arith.constant 0 : index
    %c0_2 = arith.constant 0 : index
    %1 = vector.load %arg2[%c0_1, %c0_2] : memref<32x5xbf16, #tpu.memory_space<vmem>>, vector<32x5xbf16>
    %cst = arith.constant dense<0.000000e+00> : vector<2x5xf32>
    %2 = tpu.matmul %0, %1, %cst {dimension_numbers = #tpu.dot_dimension_numbers<[1], [0], [0], [1], [0, 0, 1, 1], [], []>} : vector<2x32xbf16>, vector<32x5xbf16>, vector<2x5xf32> -> vector<2x5xf32>
    %c0_3 = arith.constant 0 : index
    %c0_4 = arith.constant 0 : index
    %3 = vector.load %arg3[%c0_3, %c0_4] : memref<1x5xf32, #tpu.memory_space<vmem>>, vector<1x5xf32>
    %4 = vector.broadcast %3 : vector<1x5xf32> to vector<2x5xf32>
    %5 = arith.addf %2, %4 : vector<2x5xf32>
    %c0_5 = arith.constant 0 : index
    %c0_6 = arith.constant 0 : index
    %6 = vector.load %arg4[%c0_5, %c0_6] : memref<2x5xf32, #tpu.memory_space<vmem>>, vector<2x5xf32>
    tpu.vector_store %arg4[%c0_5, %c0_6], %5 {strides = array<i32>} : memref<2x5xf32, #tpu.memory_space<vmem>>, vector<2x5xf32>,
    return
  }
  func.func @transform_0(%arg0: i32) -> (i32, i32) {
    %c0_i32 = arith.constant 0 : i32
    %c0_i32_0 = arith.constant 0 : i32
    %c0_i32_1 = arith.constant 0 : i32
    return %c0_i32, %c0_i32_0 : i32, i32
  }
  func.func @transform_1(%arg0: i32) -> (i32, i32) {
    %c0_i32 = arith.constant 0 : i32
    %c0_i32_0 = arith.constant 0 : i32
    %c0_i32_1 = arith.constant 0 : i32
    return %c0_i32, %c0_i32_0 : i32, i32
  }
  func.func @transform_2(%arg0: i32) -> (i32, i32) {
    %c0_i32 = arith.constant 0 : i32
    %c0_i32_0 = arith.constant 0 : i32
    %c0_i32_1 = arith.constant 0 : i32
    return %c0_i32, %c0_i32_0 : i32, i32
  }
  func.func @transform_3(%arg0: i32) -> (i32, i32) {
    %c0_i32 = arith.constant 0 : i32
    %c0_i32_0 = arith.constant 0 : i32
    %c0_i32_1 = arith.constant 0 : i32
    return %c0_i32, %c0_i32_0 : i32, i32
  }
}

</mosaic_0001>

<bundles_post_ra>
// kernel: tpu_custom_call.1
= control target key start
LH: loop header
LB: loop body
LE: loop exit
PB: predicated region body
PF: predicated region fallthrough
CT: control target
= control target key end

     0   :  { %v142_v1 = vmov 0.0   ;;  %vm143_vm0 = vmmov 0   ;;  %s180_s0 = inlined_call_operand.vmem [shape: bf16[2,32], index: 0, kind: input, shape index: {}]   ;;  %s181_s1 = inlined_call_operand.vmem [shape: bf16[32,5], index: 1, kind: input, shape index: {}]   ;;  %s182_s2 = inlined_call_operand.vmem [shape: f32[1,5], index: 2, kind: input, shape index: {}]   ;;  %s183_s3 = inlined_call_operand.hbm [shape: f32[2,5], index: 3, kind: output, shape index: {}]  }
   0x1   :  { %v118_v0 = vld [vmem:[%s181_s1 + $0x8] sm:$0xff]   ;;  %107 = vmatprep.subr.bf16.mxu0 %v142_v1  ;;  %v119_v2 = vld [vmem:[%s181_s1] sm:$0xff]   ;;  %111 = vmatprep.mubr.msk.bf16.mxu0 %vm143_vm0, %v142_v1 }
   0x2   :  { %108 = vmatpush3.bf16.msra.mxu0 %v118_v0 }
   0x3   :  { %109 = vmatprep.subr.bf16.mxu0 %v142_v1 }
   0x4   :  { %8 = vsyncpa [#allocation3], 0  ;;  %v16_v3 = vld [vmem:[%s180_s0] sm:$0x1]  ;;  %vm40_vm1 = vcmask 261120   ;;  %s144_s20 = smov [#allocation2]  }
   0x5   :  { %v100_v4 = vld [vmem:[%s182_s2] ss:$0 sm:$0xff]  ;;  %s92_s21 = sshll.u32 %s144_s20, 4  ;;  %vm84_vm2 = vcmask 33792   ;;  %s93_s21 = int_to_ptr.vmem [resolvable:$true] %s92_s21 }
   0x6   :  { %110 = vmatpush3.bf16.msra.mxu0 %v119_v2  ;;  %s120_s1 = scalar_lea.vmem %s93_s21, 32  ;;  %p125_p1 = scmp.lt.s32.totalorder %s93_s21, %s93_s21 }
   0x7   :  { %p121_p0 = scmp.ne.s32.totalorder %s93_s21, %s120_s1  ;;  %p126_p2 = scmp.lt.s32.totalorder %s120_s1, %s120_s1 }
   0x9   :  { %112 = vmatmul.mubr.msk.bf16.vlgmr.msra.gmra.mxu0 %vm40_vm1, %v16_v3  ;;  %p127_p3 = por %p126_p2, %p125_p1 }
   0xb   :  { %p128_p4 = pnand %p127_p3, %p121_p0 }
  0xc9   :  { %v78_v5 = vpop.f32.mrf.mxu0 }
  0xca   :  { %v79_v6 = vadd.f32 %v100_v4, %v78_v5 }
  0xcb   :  { %v113_v7 = vpop.f32.mrf.mxu0 }
  0xcc   :  { %85 = vst.msk [vmem:[#allocation2] sm:$0x3] %vm84_vm2, %v79_v6 }
  0xcd   :  { %v81_v8 = vpop.f32.mrf.mxu0 }
  0xce   :  { %131 = shalt.err (!%p128_p4)
}
  0xcf   :  { %95 = dma.vmem_to_hbm [thread:$0]  %s93_s21, 32, %s183_s3, [#allocation3]   ;;  %v114_v9 = vpop.f32.mrf.mxu0 }
  0xd0   :  { %140 = dma.done.wait [#allocation3], 32  }
  0xd1   :  { %141 = vsyncadd [#allocation3], 4294967264 }
  0xd2   :  { %99 = vsyncpa [#allocation3], 1 }

</bundles_post_ra>
